<compile_context>
chip_gen: v7x
topology: tpu7x:2x2x1
jax: 0.10.0
libtpu: 0.0.40
codegen_flags: <defaults>
</compile_context>

<pallas_src>
import functools

import jax
import jax.numpy as jnp
from jax.experimental import pallas as pl
from jax.experimental.pallas import tpu as pltpu


def _round_up(v, m):
    return ((v + m - 1) // m) * m


def _stacked_lstm_kernel(x_ref, h0_ref, c0_ref, w_ref, h_out_ref, c_out_ref,
                         lhs_scr, *, d, h, dmax, bias_col, layers_per_step):
    """One grid step == `layers_per_step` LSTM layers.

    x_ref:    (Bp, D)          external input (resident; used only at step 0)
    h0_ref:   (k, Bp, H)       previous hidden states of this step's layers
    c0_ref:   (k, Bp, H)       previous cell states
    w_ref:    (k, Kp, Gp)      fused, padded [W_ih; W_hh; b] per layer
    h_out_ref:(k, Bp, H)       new hidden states
    c_out_ref:(k, Bp, H)       new cell states
    lhs_scr:  (Bp, Kp)         fused matmul LHS [x|h|1|0...], persists across steps
    """
    step = pl.program_id(0)

    @pl.when(step == 0)
    def _():
        # Zero the fused LHS once (so padded lanes can never hold NaN
        # garbage), set the bias lane to 1.0 and load the external input.
        col = jax.lax.broadcasted_iota(jnp.int32, lhs_scr.shape, 1)
        lhs_scr[...] = jnp.where(col == bias_col, 1.0, 0.0).astype(lhs_scr.dtype)
        lhs_scr[:, 0:d] = x_ref[...].astype(lhs_scr.dtype)

    for j in range(layers_per_step):          # static unroll
        # Refresh the recurrent half with this layer's h_0.
        lhs_scr[:, dmax:dmax + h] = h0_ref[j].astype(lhs_scr.dtype)

        # One fused MXU matmul per layer: [x|h|1] @ [W_ih; W_hh; b], f32 acc.
        gates = jnp.dot(lhs_scr[...], w_ref[j],
                        preferred_element_type=jnp.float32)

        # PyTorch LSTMCell gate order: i, f, g, o (contiguous H-wide blocks).
        i_g = jax.nn.sigmoid(gates[:, 0 * h:1 * h])
        f_g = jax.nn.sigmoid(gates[:, 1 * h:2 * h])
        g_g = jnp.tanh(gates[:, 2 * h:3 * h])
        o_g = jax.nn.sigmoid(gates[:, 3 * h:4 * h])

        c_new = f_g * c0_ref[j].astype(jnp.float32) + i_g * g_g
        h_new = o_g * jnp.tanh(c_new)

        c_out_ref[j] = c_new.astype(c_out_ref.dtype)
        h_out_ref[j] = h_new.astype(h_out_ref.dtype)

        # Carry h (dropout p=0 => identity) as the next layer's input half.
        # Any stale x lanes in [h:dmax] meet zero-padded weight rows.
        lhs_scr[:, 0:h] = h_new.astype(lhs_scr.dtype)


def _pick_layers_per_step(num_layers, weight_block_bytes):
    """Amortize the ~0.35us per-grid-step overhead for tiny weight blocks."""
    if weight_block_bytes >= (512 << 10):
        return 1
    for k in (4, 3, 2):
        if num_layers % k == 0 and 2 * k * weight_block_bytes <= (4 << 20):
            return k
    return 1


@jax.jit
def stacked_lstm_forward(x, h0, c0, w_packed):
    """Matches StackedLSTM.forward(input, (h_0, c_0)) with dropout p=0.

    x:        (B, D)
    h0, c0:   (L, B, H)
    w_packed: (L, Kp, Gp)   from pack_stacked_lstm_params (bias folded in)
    returns (output, (h_1, c_1)) with output = top-layer hidden (B, H).
    """
    L, B, H = h0.shape
    D = x.shape[1]
    Kp, Gp = w_packed.shape[1], w_packed.shape[2]
    Dmax = max(D, H)
    bias_col = Dmax + H
    assert Gp >= 4 * H and Kp >= Dmax + H + 1, "weight packing mismatch"
    Bp = _round_up(B, 8)
    out_dtype = x.dtype

    # Pad batch to a multiple of 8 sublanes; padded rows are discarded at the
    # end (they never contaminate real rows: the matmul is row-wise in batch).
    x_p = jnp.zeros((Bp, D), x.dtype).at[:B].set(x)
    h0_p = jnp.zeros((L, Bp, H), h0.dtype).at[:, :B].set(h0)
    c0_p = jnp.zeros((L, Bp, H), c0.dtype).at[:, :B].set(c0)

    w_isz = jnp.dtype(w_packed.dtype).itemsize
    st_isz = jnp.dtype(h0.dtype).itemsize
    out_isz = jnp.dtype(out_dtype).itemsize
    weight_block_bytes = Kp * Gp * w_isz
    k = _pick_layers_per_step(L, weight_block_bytes)
    n_steps = L // k

    kernel = functools.partial(_stacked_lstm_kernel, d=D, h=H, dmax=Dmax,
                               bias_col=bias_col, layers_per_step=k)

    # Explicit VMEM budget: double-buffered weights dominate for large H.
    vmem_bytes = (2 * k * weight_block_bytes
                  + 2 * Bp * D * jnp.dtype(x.dtype).itemsize
                  + 2 * 2 * k * Bp * H * st_isz
                  + 2 * 2 * k * Bp * H * out_isz
                  + Bp * Kp * w_isz)
    vmem_limit = min(max(int(vmem_bytes * 1.5) + (2 << 20), 8 << 20), 128 << 20)

    cost = pl.CostEstimate(
        flops=2 * L * Bp * Kp * Gp,
        transcendentals=5 * L * Bp * H,
        bytes_accessed=int(L * weight_block_bytes
                           + x_p.size * jnp.dtype(x_p.dtype).itemsize
                           + 2 * (h0_p.size + c0_p.size) * st_isz),
    )

    h_out, c_out = pl.pallas_call(
        kernel,
        out_shape=(
            jax.ShapeDtypeStruct((L, Bp, H), out_dtype),
            jax.ShapeDtypeStruct((L, Bp, H), out_dtype),
        ),
        grid_spec=pltpu.PrefetchScalarGridSpec(
            num_scalar_prefetch=0,
            grid=(n_steps,),
            in_specs=[
                pl.BlockSpec((Bp, D), lambda s: (0, 0)),          # x (resident)
                pl.BlockSpec((k, Bp, H), lambda s: (s, 0, 0)),    # h0 block
                pl.BlockSpec((k, Bp, H), lambda s: (s, 0, 0)),    # c0 block
                pl.BlockSpec((k, Kp, Gp), lambda s: (s, 0, 0)),   # weights block
            ],
            out_specs=(
                pl.BlockSpec((k, Bp, H), lambda s: (s, 0, 0)),
                pl.BlockSpec((k, Bp, H), lambda s: (s, 0, 0)),
            ),
            scratch_shapes=[pltpu.VMEM((Bp, Kp), w_packed.dtype)],
        ),
        compiler_params=pltpu.CompilerParams(
            dimension_semantics=("arbitrary",),
            vmem_limit_bytes=vmem_limit),
        cost_estimate=cost,
    )(x_p, h0_p, c0_p, w_packed)

    h_1 = h_out[:, :B, :]
    c_1 = c_out[:, :B, :]
    return h_1[-1], (h_1, c_1)


def init_stacked_lstm_params(key, num_layers, input_size, hidden_size,
                             dtype=jnp.float32):
    """PyTorch LSTMCell-style init: U(-1/sqrt(H), 1/sqrt(H)).

    Returns a list of (w_ih_t (Din,4H), w_hh_t (H,4H), b_ih (4H,), b_hh (4H,))
    already transposed so gates = x @ w_ih_t + h @ w_hh_t + b_ih + b_hh.
    """
    params = []
    bound = 1.0 / (hidden_size ** 0.5)
    in_dim = input_size
    for layer in range(num_layers):
        k = jax.random.fold_in(key, layer)
        k_ih, k_hh, k_bih, k_bhh = jax.random.split(k, 4)
        w_ih_t = jax.random.uniform(k_ih, (in_dim, 4 * hidden_size),
                                    dtype=dtype, minval=-bound, maxval=bound)
        w_hh_t = jax.random.uniform(k_hh, (hidden_size, 4 * hidden_size),
                                    dtype=dtype, minval=-bound, maxval=bound)
        b_ih = jax.random.uniform(k_bih, (4 * hidden_size,),
                                  dtype=dtype, minval=-bound, maxval=bound)
        b_hh = jax.random.uniform(k_bhh, (4 * hidden_size,),
                                  dtype=dtype, minval=-bound, maxval=bound)
        params.append((w_ih_t, w_hh_t, b_ih, b_hh))
        in_dim = hidden_size
    return params


def pack_stacked_lstm_params(params, input_size, hidden_size,
                             param_dtype=jnp.bfloat16):
    """Pack per-layer weights into the fused, compact, lane-padded layout.

    W_packed[l], shape (Kp, Gp):
        rows 0:in_dim        -> W_ih^T            (in_dim, 4H)
        rows Dmax:Dmax+H     -> W_hh^T            (H, 4H)
        row  Dmax+H          -> b_ih + b_hh       (summed in f32)
        everything else      -> 0
    with Dmax = max(D, H), Kp = round_up(Dmax+H+1, 128), Gp = round_up(4H, 128).
    The contiguous 4H gate block is padded once (not per gate).
    """
    D, H = input_size, hidden_size
    Dmax = max(D, H)
    Kp = _round_up(Dmax + H + 1, 128)
    Gp = _round_up(4 * H, 128)

    w_all = []
    for (w_ih_t, w_hh_t, b_ih, b_hh) in params:
        in_dim = w_ih_t.shape[0]
        b_comb = b_ih.astype(jnp.float32) + b_hh.astype(jnp.float32)
        w = jnp.zeros((Kp, Gp), param_dtype)
        w = w.at[0:in_dim, 0:4 * H].set(w_ih_t.astype(param_dtype))
        w = w.at[Dmax:Dmax + H, 0:4 * H].set(w_hh_t.astype(param_dtype))
        w = w.at[Dmax + H, 0:4 * H].set(b_comb.astype(param_dtype))
        w_all.append(w)
    return jnp.stack(w_all)


if __name__ == "__main__":
    num_layers = 3
    batch = 6           # deliberately not a multiple of 8 -> exercises padding
    input_size = 32
    hidden_size = 32

    key = jax.random.PRNGKey(0)
    k_x, k_h, k_c, k_p = jax.random.split(key, 4)

    x = jax.random.normal(k_x, (batch, input_size), dtype=jnp.float32)
    h0 = jax.random.normal(k_h, (num_layers, batch, hidden_size),
                           dtype=jnp.float32)
    c0 = jax.random.normal(k_c, (num_layers, batch, hidden_size),
                           dtype=jnp.float32)

    params = init_stacked_lstm_params(k_p, num_layers, input_size, hidden_size)
    # bf16 weight packing by default (half the weight DMA on the binding
    # resource); pass param_dtype=jnp.float32 for a bit-tight f32 path.
    w_packed = pack_stacked_lstm_params(params, input_size, hidden_size,
                                        param_dtype=jnp.bfloat16)

    out, (h1, c1) = stacked_lstm_forward(x, h0, c0, w_packed)
    jax.block_until_ready((out, h1, c1))

    assert out.shape == (batch, hidden_size)
    assert h1.shape == (num_layers, batch, hidden_size)
    assert c1.shape == (num_layers, batch, hidden_size)

    # Pure-JAX f32 reference of the same StackedLSTM math (dropout p=0).
    def ref_forward(x, h0, c0, params):
        H = hidden_size
        inp = x
        hs, cs = [], []
        for i, (w_ih_t, w_hh_t, b_ih, b_hh) in enumerate(params):
            gates = inp @ w_ih_t + h0[i] @ w_hh_t + (b_ih + b_hh)
            i_g = jax.nn.sigmoid(gates[:, 0:H])
            f_g = jax.nn.sigmoid(gates[:, H:2 * H])
            g_g = jnp.tanh(gates[:, 2 * H:3 * H])
            o_g = jax.nn.sigmoid(gates[:, 3 * H:4 * H])
            c_n = f_g * c0[i] + i_g * g_g
            h_n = o_g * jnp.tanh(c_n)
            inp = h_n
            hs.append(h_n)
            cs.append(c_n)
        return inp, (jnp.stack(hs), jnp.stack(cs))

    out_r, (h1_r, c1_r) = ref_forward(x, h0, c0, params)
    # bf16 weights + bf16 inter-layer carry vs f32 reference -> loose-ish tol.
    assert jnp.allclose(out, out_r, atol=2e-2, rtol=2e-2)
    assert jnp.allclose(h1, h1_r, atol=2e-2, rtol=2e-2)
    assert jnp.allclose(c1, c1_r, atol=2e-2, rtol=2e-2)

    print("KERNEL_OK")
</pallas_src>

<mosaic_0001>
module attributes {stable_mosaic.version = 11 : i64} {
  func.func @_stacked_lstm_kernel(%arg0: i32, %arg1: memref<8x32xf32, #tpu.memory_space<vmem>>, %arg2: memref<3x8x32xf32, #tpu.memory_space<vmem>>, %arg3: memref<3x8x32xf32, #tpu.memory_space<vmem>>, %arg4: memref<3x128x128xbf16, #tpu.memory_space<vmem>>, %arg5: memref<3x8x32xf32, #tpu.memory_space<vmem>>, %arg6: memref<3x8x32xf32, #tpu.memory_space<vmem>>, %arg7: memref<8x128xbf16, #tpu.memory_space<vmem>>) attributes {dimension_semantics = [#tpu.dimension_semantics<arbitrary>], iteration_bounds = array<i64: 1>, scalar_prefetch = 0 : i64, scratch_operands = 1 : i64, tpu.core_type = #tpu.core_type<tc>, window_params = [{pipeline_mode = #tpu.pipeline_mode<synchronous>, transform_indices = @transform_0, window_bounds = array<i64: 8, 32>}, {transform_indices = @transform_1, window_bounds = array<i64: 3, 8, 32>}, {transform_indices = @transform_2, window_bounds = array<i64: 3, 8, 32>}, {transform_indices = @transform_3, window_bounds = array<i64: 3, 128, 128>}, {transform_indices = @transform_4, window_bounds = array<i64: 3, 8, 32>}, {transform_indices = @transform_5, window_bounds = array<i64: 3, 8, 32>}]} {
    %c0_i32 = arith.constant 0 : i32
    %0 = arith.cmpi eq, %arg0, %c0_i32 : i32
    %1 = arith.extui %0 : i1 to i32
    %c0_i32_0 = arith.constant 0 : i32
    %2 = arith.cmpi ne, %1, %c0_i32_0 : i32
    scf.if %2 {
      %132 = tpu.iota {dimensions = array<i32: 1>} : vector<8x128xi32>
      %c64_i32 = arith.constant 64 : i32
      %133 = vector.broadcast %c64_i32 : i32 to vector<8x128xi32>
      %134 = arith.cmpi eq, %132, %133 : vector<8x128xi32>
      %cst_71 = arith.constant 1.000000e+00 : f32
      %cst_72 = arith.constant 0.000000e+00 : f32
      %135 = vector.broadcast %cst_71 : f32 to vector<8x128xf32>
      %136 = vector.broadcast %cst_72 : f32 to vector<8x128xf32>
      %137 = arith.select %134, %135, %136 : vector<8x128xi1>, vector<8x128xf32>
      %138 = arith.truncf %137 : vector<8x128xf32> to vector<8x128xbf16>
      %c0_73 = arith.constant 0 : index
      %c0_74 = arith.constant 0 : index
      %139 = vector.load %arg7[%c0_73, %c0_74] : memref<8x128xbf16, #tpu.memory_space<vmem>>, vector<8x128xbf16>
      tpu.vector_store %arg7[%c0_73, %c0_74], %138 {strides = array<i32>} : memref<8x128xbf16, #tpu.memory_space<vmem>>, vector<8x128xbf16>,
      %c0_75 = arith.constant 0 : index
      %c0_76 = arith.constant 0 : index
      %140 = vector.load %arg1[%c0_75, %c0_76] : memref<8x32xf32, #tpu.memory_space<vmem>>, vector<8x32xf32>
      %141 = arith.truncf %140 : vector<8x32xf32> to vector<8x32xbf16>
      %c0_77 = arith.constant 0 : index
      %c0_78 = arith.constant 0 : index
      %142 = vector.load %arg7[%c0_77, %c0_78] : memref<8x128xbf16, #tpu.memory_space<vmem>>, vector<8x32xbf16>
      tpu.vector_store %arg7[%c0_77, %c0_78], %141 {strides = array<i32>} : memref<8x128xbf16, #tpu.memory_space<vmem>>, vector<8x32xbf16>,
    } else {
    }
    %c0 = arith.constant 0 : index
    %c0_1 = arith.constant 0 : index
    %c0_2 = arith.constant 0 : index
    %3 = vector.load %arg2[%c0, %c0_1, %c0_2] : memref<3x8x32xf32, #tpu.memory_space<vmem>>, vector<1x8x32xf32>
    %4 = vector.shape_cast %3 : vector<1x8x32xf32> to vector<8x32xf32>
    %5 = arith.truncf %4 : vector<8x32xf32> to vector<8x32xbf16>
    %c0_3 = arith.constant 0 : index
    %c32 = arith.constant 32 : index
    %6 = vector.load %arg7[%c0_3, %c32] : memref<8x128xbf16, #tpu.memory_space<vmem>>, vector<8x32xbf16>
    tpu.vector_store %arg7[%c0_3, %c32], %5 {strides = array<i32>} : memref<8x128xbf16, #tpu.memory_space<vmem>>, vector<8x32xbf16>,
    %c0_4 = arith.constant 0 : index
    %c0_5 = arith.constant 0 : index
    %7 = vector.load %arg7[%c0_4, %c0_5] : memref<8x128xbf16, #tpu.memory_space<vmem>>, vector<8x128xbf16>
    %c0_6 = arith.constant 0 : index
    %c0_7 = arith.constant 0 : index
    %c0_8 = arith.constant 0 : index
    %8 = vector.load %arg4[%c0_6, %c0_7, %c0_8] : memref<3x128x128xbf16, #tpu.memory_space<vmem>>, vector<1x128x128xbf16>
    %9 = vector.shape_cast %8 : vector<1x128x128xbf16> to vector<128x128xbf16>
    %cst = arith.constant dense<0.000000e+00> : vector<8x128xf32>
    %10 = tpu.matmul %7, %9, %cst {dimension_numbers = #tpu.dot_dimension_numbers<[1], [0], [0], [1], [0, 0, 1, 1], [], []>} : vector<8x128xbf16>, vector<128x128xbf16>, vector<8x128xf32> -> vector<8x128xf32>
    %11 = vector.extract_strided_slice %10 {offsets = [0, 0], sizes = [8, 32], strides = [1, 1]} : vector<8x128xf32> to vector<8x32xf32>
    %12 = arith.negf %11 : vector<8x32xf32>
    %13 = math.exp %12 : vector<8x32xf32>
    %cst_9 = arith.constant 1.000000e+00 : f32
    %14 = vector.broadcast %cst_9 : f32 to vector<8x32xf32>
    %15 = arith.addf %14, %13 : vector<8x32xf32>
    %16 = arith.divf %14, %15 : vector<8x32xf32>
    %17 = vector.extract_strided_slice %10 {offsets = [0, 32], sizes = [8, 32], strides = [1, 1]} : vector<8x128xf32> to vector<8x32xf32>
    %18 = arith.negf %17 : vector<8x32xf32>
    %19 = math.exp %18 : vector<8x32xf32>
    %cst_10 = arith.constant 1.000000e+00 : f32
    %20 = vector.broadcast %cst_10 : f32 to vector<8x32xf32>
    %21 = arith.addf %20, %19 : vector<8x32xf32>
    %22 = arith.divf %20, %21 : vector<8x32xf32>
    %23 = vector.extract_strided_slice %10 {offsets = [0, 64], sizes = [8, 32], strides = [1, 1]} : vector<8x128xf32> to vector<8x32xf32>
    %24 = math.tanh %23 : vector<8x32xf32>
    %25 = vector.extract_strided_slice %10 {offsets = [0, 96], sizes = [8, 32], strides = [1, 1]} : vector<8x128xf32> to vector<8x32xf32>
    %26 = arith.negf %25 : vector<8x32xf32>
    %27 = math.exp %26 : vector<8x32xf32>
    %cst_11 = arith.constant 1.000000e+00 : f32
    %28 = vector.broadcast %cst_11 : f32 to vector<8x32xf32>
    %29 = arith.addf %28, %27 : vector<8x32xf32>
    %30 = arith.divf %28, %29 : vector<8x32xf32>
    %c0_12 = arith.constant 0 : index
    %c0_13 = arith.constant 0 : index
    %c0_14 = arith.constant 0 : index
    %31 = vector.load %arg3[%c0_12, %c0_13, %c0_14] : memref<3x8x32xf32, #tpu.memory_space<vmem>>, vector<1x8x32xf32>
    %32 = vector.shape_cast %31 : vector<1x8x32xf32> to vector<8x32xf32>
    %33 = arith.mulf %22, %32 : vector<8x32xf32>
    %34 = arith.mulf %16, %24 : vector<8x32xf32>
    %35 = arith.addf %33, %34 : vector<8x32xf32>
    %36 = math.tanh %35 : vector<8x32xf32>
    %37 = arith.mulf %30, %36 : vector<8x32xf32>
    %c0_15 = arith.constant 0 : index
    %c0_16 = arith.constant 0 : index
    %c0_17 = arith.constant 0 : index
    %38 = vector.load %arg6[%c0_15, %c0_16, %c0_17] : memref<3x8x32xf32, #tpu.memory_space<vmem>>, vector<1x8x32xf32>
    %39 = vector.shape_cast %38 : vector<1x8x32xf32> to vector<8x32xf32>
    %40 = vector.shape_cast %35 : vector<8x32xf32> to vector<1x8x32xf32>
    tpu.vector_store %arg6[%c0_15, %c0_16, %c0_17], %40 {strides = array<i32>} : memref<3x8x32xf32, #tpu.memory_space<vmem>>, vector<1x8x32xf32>,
    %c0_18 = arith.constant 0 : index
    %c0_19 = arith.constant 0 : index
    %c0_20 = arith.constant 0 : index
    %41 = vector.load %arg5[%c0_18, %c0_19, %c0_20] : memref<3x8x32xf32, #tpu.memory_space<vmem>>, vector<1x8x32xf32>
    %42 = vector.shape_cast %41 : vector<1x8x32xf32> to vector<8x32xf32>
    %43 = vector.shape_cast %37 : vector<8x32xf32> to vector<1x8x32xf32>
    tpu.vector_store %arg5[%c0_18, %c0_19, %c0_20], %43 {strides = array<i32>} : memref<3x8x32xf32, #tpu.memory_space<vmem>>, vector<1x8x32xf32>,
    %44 = arith.truncf %37 : vector<8x32xf32> to vector<8x32xbf16>
    %c0_21 = arith.constant 0 : index
    %c0_22 = arith.constant 0 : index
    %45 = vector.load %arg7[%c0_21, %c0_22] : memref<8x128xbf16, #tpu.memory_space<vmem>>, vector<8x32xbf16>
    tpu.vector_store %arg7[%c0_21, %c0_22], %44 {strides = array<i32>} : memref<8x128xbf16, #tpu.memory_space<vmem>>, vector<8x32xbf16>,
    %c1 = arith.constant 1 : index
    %c0_23 = arith.constant 0 : index
    %c0_24 = arith.constant 0 : index
    %46 = vector.load %arg2[%c1, %c0_23, %c0_24] : memref<3x8x32xf32, #tpu.memory_space<vmem>>, vector<1x8x32xf32>
    %47 = vector.shape_cast %46 : vector<1x8x32xf32> to vector<8x32xf32>
    %48 = arith.truncf %47 : vector<8x32xf32> to vector<8x32xbf16>
    %c0_25 = arith.constant 0 : index
    %c32_26 = arith.constant 32 : index
    %49 = vector.load %arg7[%c0_25, %c32_26] : memref<8x128xbf16, #tpu.memory_space<vmem>>, vector<8x32xbf16>
    tpu.vector_store %arg7[%c0_25, %c32_26], %48 {strides = array<i32>} : memref<8x128xbf16, #tpu.memory_space<vmem>>, vector<8x32xbf16>,
    %c0_27 = arith.constant 0 : index
    %c0_28 = arith.constant 0 : index
    %50 = vector.load %arg7[%c0_27, %c0_28] : memref<8x128xbf16, #tpu.memory_space<vmem>>, vector<8x128xbf16>
    %c1_29 = arith.constant 1 : index
    %c0_30 = arith.constant 0 : index
    %c0_31 = arith.constant 0 : index
    %51 = vector.load %arg4[%c1_29, %c0_30, %c0_31] : memref<3x128x128xbf16, #tpu.memory_space<vmem>>, vector<1x128x128xbf16>
    %52 = vector.shape_cast %51 : vector<1x128x128xbf16> to vector<128x128xbf16>
    %cst_32 = arith.constant dense<0.000000e+00> : vector<8x128xf32>
    %53 = tpu.matmul %50, %52, %cst_32 {dimension_numbers = #tpu.dot_dimension_numbers<[1], [0], [0], [1], [0, 0, 1, 1], [], []>} : vector<8x128xbf16>, vector<128x128xbf16>, vector<8x128xf32> -> vector<8x128xf32>
    %54 = vector.extract_strided_slice %53 {offsets = [0, 0], sizes = [8, 32], strides = [1, 1]} : vector<8x128xf32> to vector<8x32xf32>
    %55 = arith.negf %54 : vector<8x32xf32>
    %56 = math.exp %55 : vector<8x32xf32>
    %cst_33 = arith.constant 1.000000e+00 : f32
    %57 = vector.broadcast %cst_33 : f32 to vector<8x32xf32>
    %58 = arith.addf %57, %56 : vector<8x32xf32>
    %59 = arith.divf %57, %58 : vector<8x32xf32>
    %60 = vector.extract_strided_slice %53 {offsets = [0, 32], sizes = [8, 32], strides = [1, 1]} : vector<8x128xf32> to vector<8x32xf32>
    %61 = arith.negf %60 : vector<8x32xf32>
    %62 = math.exp %61 : vector<8x32xf32>
    %cst_34 = arith.constant 1.000000e+00 : f32
    %63 = vector.broadcast %cst_34 : f32 to vector<8x32xf32>
    %64 = arith.addf %63, %62 : vector<8x32xf32>
    %65 = arith.divf %63, %64 : vector<8x32xf32>
    %66 = vector.extract_strided_slice %53 {offsets = [0, 64], sizes = [8, 32], strides = [1, 1]} : vector<8x128xf32> to vector<8x32xf32>
    %67 = math.tanh %66 : vector<8x32xf32>
    %68 = vector.extract_strided_slice %53 {offsets = [0, 96], sizes = [8, 32], strides = [1, 1]} : vector<8x128xf32> to vector<8x32xf32>
    %69 = arith.negf %68 : vector<8x32xf32>
    %70 = math.exp %69 : vector<8x32xf32>
    %cst_35 = arith.constant 1.000000e+00 : f32
    %71 = vector.broadcast %cst_35 : f32 to vector<8x32xf32>
    %72 = arith.addf %71, %70 : vector<8x32xf32>
    %73 = arith.divf %71, %72 : vector<8x32xf32>
    %c1_36 = arith.constant 1 : index
    %c0_37 = arith.constant 0 : index
    %c0_38 = arith.constant 0 : index
    %74 = vector.load %arg3[%c1_36, %c0_37, %c0_38] : memref<3x8x32xf32, #tpu.memory_space<vmem>>, vector<1x8x32xf32>
    %75 = vector.shape_cast %74 : vector<1x8x32xf32> to vector<8x32xf32>
    %76 = arith.mulf %65, %75 : vector<8x32xf32>
    %77 = arith.mulf %59, %67 : vector<8x32xf32>
    %78 = arith.addf %76, %77 : vector<8x32xf32>
    %79 = math.tanh %78 : vector<8x32xf32>
    %80 = arith.mulf %73, %79 : vector<8x32xf32>
    %c1_39 = arith.constant 1 : index
    %c0_40 = arith.constant 0 : index
    %c0_41 = arith.constant 0 : index
    %81 = vector.load %arg6[%c1_39, %c0_40, %c0_41] : memref<3x8x32xf32, #tpu.memory_space<vmem>>, vector<1x8x32xf32>
    %82 = vector.shape_cast %81 : vector<1x8x32xf32> to vector<8x32xf32>
    %83 = vector.shape_cast %78 : vector<8x32xf32> to vector<1x8x32xf32>
    tpu.vector_store %arg6[%c1_39, %c0_40, %c0_41], %83 {strides = array<i32>} : memref<3x8x32xf32, #tpu.memory_space<vmem>>, vector<1x8x32xf32>,
    %c1_42 = arith.constant 1 : index
    %c0_43 = arith.constant 0 : index
    %c0_44 = arith.constant 0 : index
    %84 = vector.load %arg5[%c1_42, %c0_43, %c0_44] : memref<3x8x32xf32, #tpu.memory_space<vmem>>, vector<1x8x32xf32>
    %85 = vector.shape_cast %84 : vector<1x8x32xf32> to vector<8x32xf32>
    %86 = vector.shape_cast %80 : vector<8x32xf32> to vector<1x8x32xf32>
    tpu.vector_store %arg5[%c1_42, %c0_43, %c0_44], %86 {strides = array<i32>} : memref<3x8x32xf32, #tpu.memory_space<vmem>>, vector<1x8x32xf32>,
    %87 = arith.truncf %80 : vector<8x32xf32> to vector<8x32xbf16>
    %c0_45 = arith.constant 0 : index
    %c0_46 = arith.constant 0 : index
    %88 = vector.load %arg7[%c0_45, %c0_46] : memref<8x128xbf16, #tpu.memory_space<vmem>>, vector<8x32xbf16>
    tpu.vector_store %arg7[%c0_45, %c0_46], %87 {strides = array<i32>} : memref<8x128xbf16, #tpu.memory_space<vmem>>, vector<8x32xbf16>,
    %c2 = arith.constant 2 : index
    %c0_47 = arith.constant 0 : index
    %c0_48 = arith.constant 0 : index
    %89 = vector.load %arg2[%c2, %c0_47, %c0_48] : memref<3x8x32xf32, #tpu.memory_space<vmem>>, vector<1x8x32xf32>
    %90 = vector.shape_cast %89 : vector<1x8x32xf32> to vector<8x32xf32>
    %91 = arith.truncf %90 : vector<8x32xf32> to vector<8x32xbf16>
    %c0_49 = arith.constant 0 : index
    %c32_50 = arith.constant 32 : index
    %92 = vector.load %arg7[%c0_49, %c32_50] : memref<8x128xbf16, #tpu.memory_space<vmem>>, vector<8x32xbf16>
    tpu.vector_store %arg7[%c0_49, %c32_50], %91 {strides = array<i32>} : memref<8x128xbf16, #tpu.memory_space<vmem>>, vector<8x32xbf16>,
    %c0_51 = arith.constant 0 : index
    %c0_52 = arith.constant 0 : index
    %93 = vector.load %arg7[%c0_51, %c0_52] : memref<8x128xbf16, #tpu.memory_space<vmem>>, vector<8x128xbf16>
    %c2_53 = arith.constant 2 : index
    %c0_54 = arith.constant 0 : index
    %c0_55 = arith.constant 0 : index
    %94 = vector.load %arg4[%c2_53, %c0_54, %c0_55] : memref<3x128x128xbf16, #tpu.memory_space<vmem>>, vector<1x128x128xbf16>
    %95 = vector.shape_cast %94 : vector<1x128x128xbf16> to vector<128x128xbf16>
    %cst_56 = arith.constant dense<0.000000e+00> : vector<8x128xf32>
    %96 = tpu.matmul %93, %95, %cst_56 {dimension_numbers = #tpu.dot_dimension_numbers<[1], [0], [0], [1], [0, 0, 1, 1], [], []>} : vector<8x128xbf16>, vector<128x128xbf16>, vector<8x128xf32> -> vector<8x128xf32>
    %97 = vector.extract_strided_slice %96 {offsets = [0, 0], sizes = [8, 32], strides = [1, 1]} : vector<8x128xf32> to vector<8x32xf32>
    %98 = arith.negf %97 : vector<8x32xf32>
    %99 = math.exp %98 : vector<8x32xf32>
    %cst_57 = arith.constant 1.000000e+00 : f32
    %100 = vector.broadcast %cst_57 : f32 to vector<8x32xf32>
    %101 = arith.addf %100, %99 : vector<8x32xf32>
    %102 = arith.divf %100, %101 : vector<8x32xf32>
    %103 = vector.extract_strided_slice %96 {offsets = [0, 32], sizes = [8, 32], strides = [1, 1]} : vector<8x128xf32> to vector<8x32xf32>
    %104 = arith.negf %103 : vector<8x32xf32>
    %105 = math.exp %104 : vector<8x32xf32>
    %cst_58 = arith.constant 1.000000e+00 : f32
    %106 = vector.broadcast %cst_58 : f32 to vector<8x32xf32>
    %107 = arith.addf %106, %105 : vector<8x32xf32>
    %108 = arith.divf %106, %107 : vector<8x32xf32>
    %109 = vector.extract_strided_slice %96 {offsets = [0, 64], sizes = [8, 32], strides = [1, 1]} : vector<8x128xf32> to vector<8x32xf32>
    %110 = math.tanh %109 : vector<8x32xf32>
    %111 = vector.extract_strided_slice %96 {offsets = [0, 96], sizes = [8, 32], strides = [1, 1]} : vector<8x128xf32> to vector<8x32xf32>
    %112 = arith.negf %111 : vector<8x32xf32>
    %113 = math.exp %112 : vector<8x32xf32>
    %cst_59 = arith.constant 1.000000e+00 : f32
    %114 = vector.broadcast %cst_59 : f32 to vector<8x32xf32>
    %115 = arith.addf %114, %113 : vector<8x32xf32>
    %116 = arith.divf %114, %115 : vector<8x32xf32>
    %c2_60 = arith.constant 2 : index
    %c0_61 = arith.constant 0 : index
    %c0_62 = arith.constant 0 : index
    %117 = vector.load %arg3[%c2_60, %c0_61, %c0_62] : memref<3x8x32xf32, #tpu.memory_space<vmem>>, vector<1x8x32xf32>
    %118 = vector.shape_cast %117 : vector<1x8x32xf32> to vector<8x32xf32>
    %119 = arith.mulf %108, %118 : vector<8x32xf32>
    %120 = arith.mulf %102, %110 : vector<8x32xf32>
    %121 = arith.addf %119, %120 : vector<8x32xf32>
    %122 = math.tanh %121 : vector<8x32xf32>
    %123 = arith.mulf %116, %122 : vector<8x32xf32>
    %c2_63 = arith.constant 2 : index
    %c0_64 = arith.constant 0 : index
    %c0_65 = arith.constant 0 : index
    %124 = vector.load %arg6[%c2_63, %c0_64, %c0_65] : memref<3x8x32xf32, #tpu.memory_space<vmem>>, vector<1x8x32xf32>
    %125 = vector.shape_cast %124 : vector<1x8x32xf32> to vector<8x32xf32>
    %126 = vector.shape_cast %121 : vector<8x32xf32> to vector<1x8x32xf32>
    tpu.vector_store %arg6[%c2_63, %c0_64, %c0_65], %126 {strides = array<i32>} : memref<3x8x32xf32, #tpu.memory_space<vmem>>, vector<1x8x32xf32>,
    %c2_66 = arith.constant 2 : index
    %c0_67 = arith.constant 0 : index
    %c0_68 = arith.constant 0 : index
    %127 = vector.load %arg5[%c2_66, %c0_67, %c0_68] : memref<3x8x32xf32, #tpu.memory_space<vmem>>, vector<1x8x32xf32>
    %128 = vector.shape_cast %127 : vector<1x8x32xf32> to vector<8x32xf32>
    %129 = vector.shape_cast %123 : vector<8x32xf32> to vector<1x8x32xf32>
    tpu.vector_store %arg5[%c2_66, %c0_67, %c0_68], %129 {strides = array<i32>} : memref<3x8x32xf32, #tpu.memory_space<vmem>>, vector<1x8x32xf32>,
    %130 = arith.truncf %123 : vector<8x32xf32> to vector<8x32xbf16>
    %c0_69 = arith.constant 0 : index
    %c0_70 = arith.constant 0 : index
    %131 = vector.load %arg7[%c0_69, %c0_70] : memref<8x128xbf16, #tpu.memory_space<vmem>>, vector<8x32xbf16>
    tpu.vector_store %arg7[%c0_69, %c0_70], %130 {strides = array<i32>} : memref<8x128xbf16, #tpu.memory_space<vmem>>, vector<8x32xbf16>,
    return
  }
  func.func @transform_0(%arg0: i32) -> (i32, i32) {
    %c0_i32 = arith.constant 0 : i32
    %c0_i32_0 = arith.constant 0 : i32
    %c0_i32_1 = arith.constant 0 : i32
    return %c0_i32, %c0_i32_0 : i32, i32
  }
  func.func @transform_1(%arg0: i32) -> (i32, i32, i32) {
    %c0_i32 = arith.constant 0 : i32
    %c0_i32_0 = arith.constant 0 : i32
    %c0_i32_1 = arith.constant 0 : i32
    return %arg0, %c0_i32, %c0_i32_0 : i32, i32, i32
  }
  func.func @transform_2(%arg0: i32) -> (i32, i32, i32) {
    %c0_i32 = arith.constant 0 : i32
    %c0_i32_0 = arith.constant 0 : i32
    %c0_i32_1 = arith.constant 0 : i32
    return %arg0, %c0_i32, %c0_i32_0 : i32, i32, i32
  }
  func.func @transform_3(%arg0: i32) -> (i32, i32, i32) {
    %c0_i32 = arith.constant 0 : i32
    %c0_i32_0 = arith.constant 0 : i32
    %c0_i32_1 = arith.constant 0 : i32
    return %arg0, %c0_i32, %c0_i32_0 : i32, i32, i32
  }
  func.func @transform_4(%arg0: i32) -> (i32, i32, i32) {
    %c0_i32 = arith.constant 0 : i32
    %c0_i32_0 = arith.constant 0 : i32
    %c0_i32_1 = arith.constant 0 : i32
    return %arg0, %c0_i32, %c0_i32_0 : i32, i32, i32
  }
  func.func @transform_5(%arg0: i32) -> (i32, i32, i32) {
    %c0_i32 = arith.constant 0 : i32
    %c0_i32_0 = arith.constant 0 : i32
    %c0_i32_1 = arith.constant 0 : i32
    return %arg0, %c0_i32, %c0_i32_0 : i32, i32, i32
  }
}

</mosaic_0001>

<bundles_post_ra>
// kernel: stacked_lstm_forward.1
= control target key start
LH: loop header
LB: loop body
LE: loop exit
PB: predicated region body
PF: predicated region fallthrough
CT: control target
= control target key end

     0   :  { %11 = vsyncpa [#allocation4], 0  ;;  %s978_s0 = inlined_call_operand.vmem [shape: f32[8,32], index: 0, kind: input, shape index: {}]   ;;  %s979_s1 = inlined_call_operand.vmem [shape: f32[3,8,32], index: 1, kind: input, shape index: {}]   ;;  %s980_s2 = inlined_call_operand.vmem [shape: f32[3,8,32], index: 2, kind: input, shape index: {}]   ;;  %s981_s3 = inlined_call_operand.hbm [shape: bf16[3,128,128], index: 3, kind: input, shape index: {}]   ;;  %s982_s4 = inlined_call_operand.vmem [shape: f32[3,8,32], index: 4, kind: output, shape index: {0}]   ;;  %s983_s5 = inlined_call_operand.hbm [shape: f32[3,8,32], index: 5, kind: output, shape index: {1}]  }
   0x1   :  { %12 = vsyncpa [#allocation5], 0  ;;  %s804_s18 = smov [#allocation3]   ;;  %s756_s22 = scalar_lea.hbm %s981_s3, 3072 }
   0x2   :  { %s24_s19 = sshll.u32 %s804_s18, 4  ;;  %p757_p0 = scmp.ne.s32.totalorder %s981_s3, %s756_s22  ;;  %s25_s19 = int_to_ptr.vmem [resolvable:$true] %s24_s19 }
   0x3   :  { %p760_p1 = scmp.lt.u32.totalorder %s756_s22, %s981_s3 }
   0x5   :  { %p762_p2 = pnand %p760_p1, %p757_p0 }
   0x7   :  { %765 = shalt.err (!%p762_p2)
}
   0x8   :  { %s766_s27 = scalar_lea.vmem %s25_s19, 3072  ;;  %p771_p4 = scmp.lt.s32.totalorder %s25_s19, %s25_s19 }
   0x9   :  { %p767_p3 = scmp.ne.s32.totalorder %s25_s19, %s766_s27  ;;  %p772_p5 = scmp.lt.s32.totalorder %s766_s27, %s766_s27 }
   0xb   :  { %p773_p6 = por %p772_p5, %p771_p4 }
   0xd   :  { %p774_p7 = pnand %p773_p6, %p767_p3 }
   0xf   :  { %777 = shalt.err (!%p774_p7)
}
  0x10   :  { %s805_s28 = smov 64   ;;  %s806_s29 = smov 4  }
  0x11   :  { %30 = dma.hbm_to_vmem [thread:$0]  %s981_s3, 3072, %s25_s19, [#allocation4], %s805_s28, %s805_s28, %s806_s29  }
  0x12   :  { %800 = dma.done.wait [#allocation4], 3072  }
  0x13   :  { %801 = vsyncadd [#allocation4], 4294964224  ;;  %v39_v0 = vlaneseq  ;;  %v807_v1 = vmov 0.0   ;;  %vm808_vm0 = vmmov 0   ;;  %v49_v5 = vld [vmem:[%s979_s1] sm:$0xff]  ;;  %s809_s8 = smov 32  }
  0x14   :  { %638 = vmatprep.subr.bf16.mxu0 %v807_v1  ;;  %658 = vmatprep.subr.bf16.mxu1 %v807_v1  ;;  %v605_v6 = vpack.c.bf16 %v49_v5, %v49_v5  ;;  %v708_v7 = vld [vmem:[#allocation3] sm:$0xff]   ;;  %v709_v8 = vld [vmem:[#allocation3 + $0x8] sm:$0xff]   ;;  %vm47_vm2 = vcmask 257024   ;;  %v710_v10 = vld [vmem:[#allocation3 + $0x10] sm:$0xff]   ;;  %vm57_vm3 = vcmask 519424   ;;  %vm197_vm4 = vcmask 261120  }
  0x15   :  { %v40_v2 = vand.u32 127, %v39_v0  ;;  %654 = vmatprep.mubr.msk.bf16.mxu0 %vm808_vm0, %v807_v1  ;;  %674 = vmatprep.mubr.msk.bf16.mxu1 %vm808_vm0, %v807_v1  ;;  %v45_v9 = vld [vmem:[%s978_s0] sm:$0xff]  ;;  %v713_v15 = vld [vmem:[#allocation3 + $0x28] sm:$0xff]   ;;  %v714_v16 = vld [vmem:[#allocation3 + $0x30] sm:$0xff]   ;;  %s811_s21 = smov [#allocation6]  }
  0x16   :  { %54 = vrot.lane.b32.xlu0 %v605_v6, %s809_s8  ;;  %639 = vmatpush3.bf16.msra.mxu0 %v708_v7  ;;  %v46_v11 = vpack.c.bf16 %v45_v9, %v45_v9  ;;  %v171_v12 = vld [vmem:[%s980_s2] sm:$0xff]  ;;  %v717_v36 = vld [vmem:[#allocation3 + $0x48] sm:$0xff]   ;;  %v718_v38 = vld [vmem:[#allocation3 + $0x50] sm:$0xff]   ;;  %s552_s22 = sshll.u32 %s811_s21, 4  ;;  %s553_s22 = int_to_ptr.vmem [resolvable:$true] %s552_s22 }
  0x17   :  { %vm41_vm1 = vcmp.eq.s32.totalorder %v40_v2, 64  ;;  %640 = vmatprep.subr.bf16.mxu0 %v807_v1  ;;  %v711_v13 = vld [vmem:[#allocation3 + $0x18] sm:$0xff]   ;;  %173 = vrot.lane.b32.xlu1 %v171_v12, %s809_s8  ;;  %v712_v14 = vld [vmem:[#allocation3 + $0x20] sm:$0xff]   ;;  %v721_v43 = vld [vmem:[#allocation3 + $0x68] sm:$0xff]   ;;  %s778_s23 = scalar_lea.vmem %s553_s22, 384  ;;  %p783_p9 = scmp.lt.s32.totalorder %s553_s22, %s553_s22 }
  0x18   :  { %v42_v3 = vsel %vm41_vm1, 1.0, %v807_v1  ;;  %v715_v17 = vld [vmem:[#allocation3 + $0x38] sm:$0xff]   ;;  %v716_v35 = vld [vmem:[#allocation3 + $0x40] sm:$0xff]   ;;  %v722_v44 = vld [vmem:[#allocation3 + $0x70] sm:$0xff]   ;;  %p779_p8 = scmp.ne.s32.totalorder %s553_s22, %s778_s23  ;;  %p784_p10 = scmp.lt.s32.totalorder %s778_s23, %s778_s23 }
  0x19   :  { %v43_v4 = vpack.c.bf16 %v42_v3, %v42_v3  ;;  %659 = vmatpush3.bf16.msra.mxu1 %v716_v35  ;;  %v577_v37 = vld [vmem:[%s979_s1 + $0x8] sm:$0xff]  ;;  %v719_v41 = vld [vmem:[#allocation3 + $0x58] sm:$0xff]   ;;  %v591_v7 = vld [vmem:[%s979_s1 + $0x10] sm:$0xff] }
  0x1a   :  { %641 = vmatpush3.bf16.msra.mxu0 %v709_v8  ;;  %660 = vmatprep.subr.bf16.mxu1 %v807_v1  ;;  %v607_v40 = vpack.c.bf16 %v577_v37, %v577_v37  ;;  %v720_v42 = vld [vmem:[#allocation3 + $0x60] sm:$0xff]   ;;  %v723_v45 = vld [vmem:[#allocation3 + $0x78] sm:$0xff]   ;;  %v725_v6 = vld [vmem:[#allocation3 + $0x88] sm:$0xff]   ;;  %p785_p11 = por %p784_p10, %p783_p9 }
  0x1b   :  { %44 = vst [vmem:[#allocation2] sm:$0xf] %v43_v4  ;;  %642 = vmatprep.subr.bf16.mxu0 %v807_v1  ;;  %v588_v48 = vld [vmem:[%s980_s2 + $0x8] sm:$0xff]  ;;  %v726_v8 = vld [vmem:[#allocation3 + $0x90] sm:$0xff]  }
  0x1c   :  { %48 = vst.msk [vmem:[#allocation2] sm:$0xf] %vm47_vm2, %v46_v11  ;;  %v724_v5 = vld [vmem:[#allocation3 + $0x80] sm:$0xff]   ;;  %v727_v11 = vld [vmem:[#allocation3 + $0x98] sm:$0xff]   ;;  %p786_p12 = pnand %p785_p11, %p779_p8 }
  0x1d   :  { %661 = vmatpush3.bf16.msra.mxu1 %v717_v36  ;;  %v728_v12 = vld [vmem:[#allocation3 + $0xa0] sm:$0xff]  }
  0x1e   :  { %643 = vmatpush3.bf16.msra.mxu0 %v710_v10  ;;  %662 = vmatprep.subr.bf16.mxu1 %v807_v1  ;;  %v609_v10 = vpack.c.bf16 %v591_v7, %v591_v7 }
  0x1f   :  { %644 = vmatprep.subr.bf16.mxu0 %v807_v1 }
  0x21   :  { %663 = vmatpush3.bf16.msra.mxu1 %v718_v38 }
  0x22   :  { %645 = vmatpush3.bf16.msra.mxu0 %v711_v13  ;;  %664 = vmatprep.subr.bf16.mxu1 %v807_v1  ;;  %v729_v13 = vld [vmem:[#allocation3 + $0xa8] sm:$0xff]  }
  0x23   :  { %646 = vmatprep.subr.bf16.mxu0 %v807_v1 }
  0x25   :  { %665 = vmatpush3.bf16.msra.mxu1 %v719_v41 }
  0x26   :  { %647 = vmatpush3.bf16.msra.mxu0 %v712_v14  ;;  %666 = vmatprep.subr.bf16.mxu1 %v807_v1  ;;  %v730_v14 = vld [vmem:[#allocation3 + $0xb0] sm:$0xff]  }
  0x27   :  { %648 = vmatprep.subr.bf16.mxu0 %v807_v1 }
  0x29   :  { %667 = vmatpush3.bf16.msra.mxu1 %v720_v42 }
  0x2a   :  { %649 = vmatpush3.bf16.msra.mxu0 %v713_v15  ;;  %668 = vmatprep.subr.bf16.mxu1 %v807_v1  ;;  %v731_v15 = vld [vmem:[#allocation3 + $0xb8] sm:$0xff]  }
  0x2b   :  { %650 = vmatprep.subr.bf16.mxu0 %v807_v1 }
  0x2d   :  { %669 = vmatpush3.bf16.msra.mxu1 %v721_v43 }
  0x2e   :  { %651 = vmatpush3.bf16.msra.mxu0 %v714_v16  ;;  %670 = vmatprep.subr.bf16.mxu1 %v807_v1 }
  0x2f   :  { %652 = vmatprep.subr.bf16.mxu0 %v807_v1 }
  0x31   :  { %671 = vmatpush3.bf16.msra.mxu1 %v722_v44 }
  0x32   :  { %653 = vmatpush3.bf16.msra.mxu0 %v715_v17  ;;  %672 = vmatprep.subr.bf16.mxu1 %v807_v1 }
  0x33   :  { %678 = vmatprep.subr.bf16.mxu0 %v807_v1 }
  0x35   :  { %673 = vmatpush3.bf16.msra.mxu1 %v723_v45 }
  0x88   :  { %v55_v18 = vpop.permute.xlu0 %54 }
  0x89   :  { %58 = vst.msk [vmem:[#allocation2] sm:$0xf] %vm57_vm3, %v55_v18  ;;  %v174_v31 = vpop.permute.xlu1 %173  ;;  %v602_v18 = vld [vmem:[%s980_s2 + $0x10] sm:$0xff]  ;;  %s810_s2 = smov 96  }
  0x90   :  { %v59_v19 = vld [vmem:[#allocation2] sm:$0xf] }
  0x91   :  { %655 = vmatmul.mubr.bf16.vlgmr.msra.gmra.mrb[0].mxu0 %v59_v19 }
  0x92   :  { %694 = vmatprep.mubr.msk.bf16.mxu0 %vm808_vm0, %v807_v1  ;;  %679 = vmatpush3.bf16.msra.mxu0 %v724_v5 }
  0x93   :  { %680 = vmatprep.subr.bf16.mxu0 %v807_v1 }
  0x96   :  { %681 = vmatpush3.bf16.msra.mxu0 %v725_v6 }
  0x97   :  { %682 = vmatprep.subr.bf16.mxu0 %v807_v1 }
  0x9a   :  { %683 = vmatpush3.bf16.msra.mxu0 %v726_v8 }
  0x9b   :  { %684 = vmatprep.subr.bf16.mxu0 %v807_v1 }
  0x9e   :  { %685 = vmatpush3.bf16.msra.mxu0 %v727_v11 }
  0x9f   :  { %686 = vmatprep.subr.bf16.mxu0 %v807_v1 }
  0xa2   :  { %687 = vmatpush3.bf16.msra.mxu0 %v728_v12 }
  0xa3   :  { %688 = vmatprep.subr.bf16.mxu0 %v807_v1 }
  0xa6   :  { %689 = vmatpush3.bf16.msra.mxu0 %v729_v13 }
  0xa7   :  { %690 = vmatprep.subr.bf16.mxu0 %v807_v1 }
  0xaa   :  { %691 = vmatpush3.bf16.msra.mxu0 %v730_v14 }
  0xab   :  { %692 = vmatprep.subr.bf16.mxu0 %v807_v1 }
  0xae   :  { %693 = vmatpush3.bf16.msra.mxu0 %v731_v15 }
 0x164   :  { %v158_v20 = vpop.f32.mrb[0].mxu0 }
 0x165   :  { %732 = vtanh.f32 %v158_v20  ;;  %v656_v21 = vpop.f32.mrb[1].mxu0  ;;  %v575_v25 = vmul.f32 -1.442695, %v158_v20 }
 0x166   :  { %v161_v22 = vpop.f32.mrb[2].mxu0 }
 0x167   :  { %v657_v23 = vpop.f32.mrb[3].mxu0  ;;  %734 = vpow2.f32 %v575_v25 }
 0x16f   :  { %v733_v24 = vpop.eup %732 }
 0x170   :  { %178 = vrot.lane.b32.xlu0 %v733_v24, %s805_s28 }
 0x171   :  { %v735_v26 = vpop.eup %734 }
 0x172   :  { %v167_v27 = vadd.f32 1.0, %v735_v26 }
 0x174   :  { %736 = vrcp.f32 %v167_v27 }
 0x17e   :  { %v737_v28 = vpop.eup %736 }
 0x17f   :  { %v176_v32 = vmul.f32 %v737_v28, %v174_v31 }
 0x1e2   :  { %v179_v29 = vpop.permute.xlu0 %178 }
 0x1e3   :  { %v181_v30 = vmul.f32 %v737_v28, %v179_v29 }
 0x1e5   :  { %183 = vrot.lane.b32.xlu1 %v181_v30, %s809_s8 }
 0x257   :  { %v184_v33 = vpop.permute.xlu1 %183 }
 0x258   :  { %v890_v34 = vadd.f32 %v184_v33, %v176_v32 }
 0x25a   :  { %738 = vtanh.f32 %v890_v34 }
 0x264   :  { %v739_v39 = vpop.eup %738 }
 0x265   :  { %189 = vrot.lane.b32.xlu0 %v739_v39, %s805_s28 }
 0x269   :  { %219 = vrot.lane.b32.xlu0 %v607_v40, %s809_s8 }
 0x26d   :  { %339 = vrot.lane.b32.xlu0 %v588_v48, %s809_s8 }
 0x2d7   :  { %v190_v46 = vpop.permute.xlu0 %189 }
 0x2d8   :  { %v905_v47 = vmul.f32 %v737_v28, %v190_v46 }
 0x2da   :  { %v606_v49 = vpack.c.bf16 %v905_v47, %v905_v47 }
 0x2db   :  { %v220_v50 = vpop.permute.xlu0 %219 }
 0x2dc   :  { %208 = vrot.lane.b32.xlu1 %v606_v49, %s809_s8 }
 0x2df   :  { %v340_v0 = vpop.permute.xlu0 %339 }
 0x34e   :  { %v209_v51 = vpop.permute.xlu1 %208 }
 0x34f   :  { %212 = vst.msk [vmem:[#allocation2] sm:$0xf] %vm47_vm2, %v209_v51 }
 0x350   :  { %222 = vst.msk [vmem:[#allocation2] sm:$0xf] %vm57_vm3, %v220_v50 }
 0x357   :  { %v223_v52 = vld [vmem:[#allocation2] sm:$0xf] }
 0x358   :  { %675 = vmatmul.mubr.bf16.vlgmr.msra.gmra.mrb[0].mxu1 %v223_v52 }
 0x42b   :  { %v323_v53 = vpop.f32.mrb[0].mxu1 }
 0x42c   :  { %740 = vtanh.f32 %v323_v53  ;;  %v676_v54 = vpop.f32.mrb[1].mxu1  ;;  %v587_v58 = vmul.f32 -1.442695, %v323_v53 }
 0x42d   :  { %v326_v55 = vpop.f32.mrb[2].mxu1 }
 0x42e   :  { %v677_v56 = vpop.f32.mrb[3].mxu1  ;;  %742 = vpow2.f32 %v587_v58 }
 0x436   :  { %v741_v57 = vpop.eup %740 }
 0x437   :  { %344 = vrot.lane.b32.xlu1 %v741_v57, %s805_s28 }
 0x438   :  { %v743_v59 = vpop.eup %742 }
 0x439   :  { %v332_v60 = vadd.f32 1.0, %v743_v59 }
 0x43b   :  { %744 = vrcp.f32 %v332_v60 }
 0x445   :  { %v745_v61 = vpop.eup %744 }
 0x446   :  { %v342_v2 = vmul.f32 %v745_v61, %v340_v0 }
 0x4a9   :  { %v345_v62 = vpop.permute.xlu1 %344 }
 0x4aa   :  { %v347_v63 = vmul.f32 %v745_v61, %v345_v62 }
 0x4ac   :  { %349 = vrot.lane.b32.xlu1 %v347_v63, %s809_s8 }
 0x51e   :  { %v350_v3 = vpop.permute.xlu1 %349 }
 0x51f   :  { %v918_v4 = vadd.f32 %v350_v3, %v342_v2 }
 0x521   :  { %746 = vtanh.f32 %v918_v4 }
 0x52b   :  { %v747_v9 = vpop.eup %746 }
 0x52c   :  { %355 = vrot.lane.b32.xlu0 %v747_v9, %s805_s28 }
 0x530   :  { %385 = vrot.lane.b32.xlu0 %v609_v10, %s809_s8 }
 0x534   :  { %505 = vrot.lane.b32.xlu0 %v602_v18, %s809_s8 }
 0x59e   :  { %v356_v16 = vpop.permute.xlu0 %355 }
 0x59f   :  { %v358_v17 = vmul.f32 %v745_v61, %v356_v16 }
 0x5a1   :  { %v608_v19 = vpack.c.bf16 %v358_v17, %v358_v17 }
 0x5a2   :  { %v386_v20 = vpop.permute.xlu0 %385 }
 0x5a3   :  { %375 = vrot.lane.b32.xlu1 %v608_v19, %s809_s8 }
 0x5a6   :  { %v506_v33 = vpop.permute.xlu0 %505 }
 0x615   :  { %v376_v21 = vpop.permute.xlu1 %375 }
 0x616   :  { %378 = vst.msk [vmem:[#allocation2] sm:$0xf] %vm47_vm2, %v376_v21 }
 0x617   :  { %388 = vst.msk [vmem:[#allocation2] sm:$0xf] %vm57_vm3, %v386_v20 }
 0x61e   :  { %v389_v22 = vld [vmem:[#allocation2] sm:$0xf] }
 0x61f   :  { %695 = vmatmul.mubr.bf16.vlgmr.msra.gmra.mrb[4].mxu0 %v389_v22 }
 0x6f2   :  { %v489_v1 = vpop.f32.mrb[4].mxu0 }
 0x6f3   :  { %748 = vtanh.f32 %v489_v1  ;;  %v696_v23 = vpop.f32.mrb[5].mxu0  ;;  %v601_v27 = vmul.f32 -1.442695, %v489_v1 }
 0x6f4   :  { %v492_v24 = vpop.f32.mrb[6].mxu0 }
 0x6f5   :  { %v697_v25 = vpop.f32.mrb[7].mxu0  ;;  %750 = vpow2.f32 %v601_v27 }
 0x6fd   :  { %v749_v26 = vpop.eup %748 }
 0x6fe   :  { %510 = vrot.lane.b32.xlu1 %v749_v26, %s805_s28 }
 0x6ff   :  { %v751_v28 = vpop.eup %750 }
 0x700   :  { %v498_v29 = vadd.f32 1.0, %v751_v28 }
 0x702   :  { %752 = vrcp.f32 %v498_v29 }
 0x70c   :  { %v753_v30 = vpop.eup %752 }
 0x70d   :  { %v508_v35 = vmul.f32 %v753_v30, %v506_v33 }
 0x770   :  { %v511_v31 = vpop.permute.xlu1 %510 }
 0x771   :  { %v513_v32 = vmul.f32 %v753_v30, %v511_v31 }
 0x773   :  { %515 = vrot.lane.b32.xlu1 %v513_v32, %s809_s8 }
 0x777   :  { %194 = vrot.lane.b32.xlu1 %v890_v34, %s810_s2 }
 0x7e5   :  { %v516_v36 = vpop.permute.xlu1 %515 }
 0x7e6   :  { %v518_v37 = vadd.f32 %v516_v36, %v508_v35 }
 0x7e8   :  { %754 = vtanh.f32 %v518_v37  ;;  %526 = vrot.lane.b32.xlu1 %v518_v37, %s810_s2 }
 0x7e9   :  { %v195_v38 = vpop.permute.xlu1 %194 }
 0x7ea   :  { %198 = vst.msk [vmem:[#allocation6] sm:$0xff] %vm197_vm4, %v195_v38 }
 0x7ec   :  { %366 = vrot.lane.b32.xlu1 %v358_v17, %s809_s8 }
 0x7f2   :  { %v755_v39 = vpop.eup %754 }
 0x7f3   :  { %521 = vrot.lane.b32.xlu0 %v755_v39, %s805_s28 }
 0x7f7   :  { %360 = vrot.lane.b32.xlu0 %v918_v4, %s810_s2 }
 0x7fb   :  { %200 = vrot.lane.b32.xlu0 %v905_v47, %s809_s8 }
 0x85a   :  { %v527_v34 = vpop.permute.xlu1 %526 }
 0x85b   :  { %530 = vst.msk [vmem:[#allocation6 + $0x10] sm:$0xff] %vm197_vm4, %v527_v34 }
 0x85e   :  { %v367_v40 = vpop.permute.xlu1 %366 }
 0x85f   :  { %589 = vst.msk [vmem:[%s982_s4 + $0x8] sm:$0xff] %vm197_vm4, %v367_v40 }
 0x865   :  { %v522_v41 = vpop.permute.xlu0 %521 }
 0x866   :  { %v524_v42 = vmul.f32 %v753_v30, %v522_v41 }
 0x868   :  { %v610_v43 = vpack.c.bf16 %v524_v42, %v524_v42  ;;  %532 = vrot.lane.b32.xlu0 %v524_v42, %s809_s8 }
 0x869   :  { %v361_v44 = vpop.permute.xlu0 %360 }
 0x86a   :  { %364 = vst.msk [vmem:[#allocation6 + $0x8] sm:$0xff] %vm197_vm4, %v361_v44  ;;  %541 = vrot.lane.b32.xlu1 %v610_v43, %s809_s8 }
 0x86b   :  { %789 = shalt.err (!%p786_p12)
}
 0x86c   :  { %s790_s26 = scalar_lea.hbm %s983_s5, 384 }
 0x86d   :  { %p791_p13 = scmp.ne.s32.totalorder %s983_s5, %s790_s26  ;;  %p794_p0 = scmp.lt.u32.totalorder %s790_s26, %s983_s5 }
 0x86f   :  { %p796_p1 = pnand %p794_p0, %p791_p13 }
 0x871   :  { %799 = shalt.err (!%p796_p1)
}
 0x872   :  { %s812_s6 = smov 128   ;;  %s813_s3 = smov 8   ;;  %v201_v45 = vpop.permute.xlu0 %200 }
 0x873   :  { %558 = dma.vmem_to_hbm [thread:$0]  %s553_s22, 384, %s983_s5, [#allocation5], %s812_s6, %s812_s6, %s813_s3  }
 0x874   :  { %203 = vst.msk [vmem:[%s982_s4] sm:$0xff] %vm197_vm4, %v201_v45 }
 0x8da   :  { %v533_v46 = vpop.permute.xlu0 %532 }
 0x8db   :  { %603 = vst.msk [vmem:[%s982_s4 + $0x10] sm:$0xff] %vm197_vm4, %v533_v46 }
 0x8dc   :  { %v542_v47 = vpop.permute.xlu1 %541 }
 0x8dd   :  { %544 = vst.msk [vmem:[#allocation2] sm:$0xf] %vm47_vm2, %v542_v47 }
 0x8de   :  { %802 = dma.done.wait [#allocation5], 384  }
 0x8df   :  { %803 = vsyncadd [#allocation5], 4294966912 }
 0x8e0   :  { %564 = vsyncpa [#allocation4], 1 }
 0x8e1   :  { %565 = vsyncpa [#allocation5], 1 }

</bundles_post_ra>
